<compile_context>
chip_gen: v7x
topology: tpu7x:2x2x1
jax: 0.10.0
libtpu: 0.0.40
codegen_flags: <defaults>
</compile_context>

<pallas_src>
import functools

import jax
import jax.numpy as jnp
from jax import lax
from jax.experimental import pallas as pl
from jax.experimental.pallas import tpu as pltpu


def _round_up(x, m):
    return (x + m - 1) // m * m


# ----------------------------------------------------------------------------
# Kernel
# ----------------------------------------------------------------------------
def _odin_mlp_kernel(num_hidden, output_dim, *refs):
    """Fused MLP forward for one batch tile.

    refs = (x, [w_i, b_i] * num_hidden, w_comb, b_comb, packed_out)
      w_comb lanes: [0:od] = W_h, [od:2od] = W_h (dup), [2od] = W_g * bn_scale,
                    rest zero.  b_comb laid out the same way.
      packed_out lanes: [0:od] = out, [od:2od] = h_feature, [2od] = g_feature.
    """
    x_ref = refs[0]
    packed_ref = refs[-1]
    w_refs = refs[1:1 + 2 * num_hidden:2]
    b_refs = refs[2:2 + 2 * num_hidden:2]
    wc_ref = refs[1 + 2 * num_hidden]
    bc_ref = refs[2 + 2 * num_hidden]

    x = x_ref[...]
    # Hidden stack: Linear + ReLU (applied to every hidden layer, as in the
    # reference module where i < num_layers - 1 always holds).
    for i in range(num_hidden):
        w = w_refs[i][...]
        b = b_refs[i][...]
        acc = jnp.dot(x.astype(w.dtype), w, preferred_element_type=jnp.float32)
        x = jnp.maximum(acc + b.astype(jnp.float32), 0.0)

    # Single fused head matmul: [h | h | g_bn | pad], lane-dense (mult. of 128).
    wc = wc_ref[...]
    comb = jnp.dot(x.astype(wc.dtype), wc, preferred_element_type=jnp.float32)
    comb = comb + bc_ref[...].astype(jnp.float32)

    od = output_dim
    lane = lax.broadcasted_iota(jnp.int32, comb.shape, 1)
    g_col = lane == 2 * od
    # Extract the (folded-BN) g-branch pre-activation via masked cross-lane sum
    # (XLU; does not contend with the MXU/VPU work above).
    g_bn = jnp.sum(jnp.where(g_col, comb, 0.0), axis=-1, keepdims=True)
    e = jnp.exp(-g_bn)                       # EUP
    g_feat = 1.0 / (1.0 + e)                 # sigmoid, only (block_n, 1) wide
    # h / sigmoid(g_bn) == h * (1 + exp(-g_bn)); exact, no wide division.
    mult = jnp.where(lane < od, 1.0 + e, 1.0)
    packed = jnp.where(g_col, g_feat, comb * mult)
    packed_ref[...] = packed.astype(packed_ref.dtype)


# ----------------------------------------------------------------------------
# Wrapper
# ----------------------------------------------------------------------------
def odin_large_mlp_forward(x, params, *, block_n=None, compute_dtype=jnp.float32):
    """x: [N, input_dim] float32. Returns (out, h_feature, g_feature)."""
    hidden_ws, hidden_bs, wh, bh, wg, bg, bn_scale, bn_shift = params
    N, input_dim = x.shape
    num_hidden = len(hidden_ws)
    hidden_dim, output_dim = wh.shape
    od = output_dim
    p_out = _round_up(2 * od + 1, 128)       # lane-dense packed output width

    # --- fold BN into the g branch and build combined [h | h | g] weight -----
    wg_s = (wg * bn_scale).astype(jnp.float32)                # (hidden, 1)
    bg_s = (bg * bn_scale + bn_shift).astype(jnp.float32)     # (1, 1)
    w_comb = jnp.zeros((hidden_dim, p_out), jnp.float32)
    w_comb = w_comb.at[:, :od].set(wh)
    w_comb = w_comb.at[:, od:2 * od].set(wh)
    w_comb = w_comb.at[:, 2 * od].set(wg_s[:, 0])
    b_comb = jnp.zeros((1, p_out), jnp.float32)
    b_comb = b_comb.at[:, :od].set(bh)
    b_comb = b_comb.at[:, od:2 * od].set(bh)
    b_comb = b_comb.at[:, 2 * od].set(bg_s[0, 0])

    # Matmul operands may be bf16 on v6e/v7x; biases/accumulation stay f32.
    weight_arrays = []
    for w, b in zip(hidden_ws, hidden_bs):
        weight_arrays += [w.astype(compute_dtype), b.astype(jnp.float32)]
    weight_arrays += [w_comb.astype(compute_dtype), b_comb]

    # --- batch tiling ---------------------------------------------------------
    if block_n is None:
        n128 = _round_up(N, 128)
        if n128 >= 2048:
            block_n = 512          # amortize per-step overhead; grid >= 4
        elif n128 >= 512:
            block_n = 256          # 256-row tiles fill v6e/v7x MXU; grid >= 2
        elif n128 >= 256:
            block_n = 128          # keep grid >= 2 for megacore sharding
        else:
            block_n = n128         # single tile
    padded_n = _round_up(N, block_n)
    if padded_n != N:
        x = jnp.pad(x, ((0, padded_n - N), (0, 0)))
    grid = (padded_n // block_n,)

    # --- specs ----------------------------------------------------------------
    # Grid-invariant weights live whole-array in VMEM (single-buffered, one DMA).
    vmem_resident = pl.BlockSpec(memory_space=pltpu.MemorySpace.VMEM)
    in_specs = [pl.BlockSpec((block_n, input_dim), lambda i: (i, 0))]
    in_specs += [vmem_resident] * len(weight_arrays)
    out_specs = pl.BlockSpec((block_n, p_out), lambda i: (i, 0))
    out_shape = jax.ShapeDtypeStruct((padded_n, p_out), jnp.float32)

    # --- cost estimate / VMEM budget -------------------------------------------
    flops_per_row = sum(2 * w.shape[0] * w.shape[1] for w in hidden_ws)
    flops_per_row += 2 * hidden_dim * p_out
    weight_bytes = sum(int(a.size) * a.dtype.itemsize for a in weight_arrays)
    bytes_accessed = (int(x.size) * x.dtype.itemsize
                      + weight_bytes
                      + padded_n * p_out * 4)
    cost = pl.CostEstimate(flops=padded_n * flops_per_row,
                           transcendentals=2 * padded_n,
                           bytes_accessed=bytes_accessed)
    # x / packed-out tiles are double-buffered; weights single-buffered; plus
    # headroom for the intermediate activation registers/spills.
    act_bytes = 2 * block_n * (input_dim * 4 + p_out * 4)
    scratch_bytes = 4 * block_n * max(hidden_dim, input_dim, p_out) * 4
    vmem_limit = int(min(max(weight_bytes + act_bytes + scratch_bytes + (4 << 20),
                             32 << 20),
                         48 << 20))   # stays below 64 MiB physical on v7x

    kernel = functools.partial(_odin_mlp_kernel, num_hidden, output_dim)
    packed = pl.pallas_call(
        kernel,
        out_shape=out_shape,
        grid=grid,
        in_specs=in_specs,
        out_specs=out_specs,
        compiler_params=pltpu.CompilerParams(
            dimension_semantics=("parallel",),
            vmem_limit_bytes=vmem_limit,
        ),
        cost_estimate=cost,
    )(x, *weight_arrays)

    packed = packed[:N]
    out = packed[:, :od]
    h_feat = packed[:, od:2 * od]
    g_feat = packed[:, 2 * od:2 * od + 1]
    return out, h_feat, g_feat


# ----------------------------------------------------------------------------
# Deterministic parameter init (mirrors nn.Linear / kaiming init shapes)
# ----------------------------------------------------------------------------
def init_params(key, input_dim, hidden_dim, output_dim, num_layers):
    keys = jax.random.split(key, 2 * num_layers + 4)
    dims = [input_dim] + [hidden_dim] * (num_layers - 1)

    hidden_ws, hidden_bs = [], []
    for i in range(num_layers - 1):
        n, k = dims[i], dims[i + 1]
        # stored pre-transposed: [in, out]
        w = jax.random.normal(keys[2 * i], (n, k), jnp.float32) / jnp.sqrt(n)
        b = jax.random.normal(keys[2 * i + 1], (1, k), jnp.float32) * 0.01
        hidden_ws.append(w)
        hidden_bs.append(b)

    # self.h : kaiming_normal_(nonlinearity='relu') -> std = sqrt(2 / fan_in); bias = 0
    wh = jax.random.normal(keys[-4], (hidden_dim, output_dim), jnp.float32) * jnp.sqrt(
        2.0 / hidden_dim
    )
    bh = jnp.zeros((1, output_dim), jnp.float32)

    # self.g : Linear(hidden_dim, 1) + BatchNorm1d(1)
    wg = jax.random.normal(keys[-3], (hidden_dim, 1), jnp.float32) / jnp.sqrt(hidden_dim)
    bg = jax.random.normal(keys[-2], (1, 1), jnp.float32) * 0.01

    # BatchNorm1d(1) eval-mode params folded into scale/shift
    gamma = jnp.ones((1, 1), jnp.float32)
    beta = jnp.zeros((1, 1), jnp.float32)
    running_mean = jnp.zeros((1, 1), jnp.float32)
    running_var = jnp.ones((1, 1), jnp.float32)
    eps = 1e-5
    bn_scale = gamma / jnp.sqrt(running_var + eps)
    bn_shift = beta - running_mean * bn_scale

    return (hidden_ws, hidden_bs, wh, bh, wg, bg, bn_scale, bn_shift)


def reference_forward(x, params):
    """Plain-JAX reference of the same forward (for verification)."""
    hidden_ws, hidden_bs, wh, bh, wg, bg, bn_scale, bn_shift = params
    h = x
    for w, b in zip(hidden_ws, hidden_bs):
        h = jnp.maximum(h @ w + b, 0.0)
    h_feat = h @ wh + bh
    g_feat = jax.nn.sigmoid((h @ wg + bg) * bn_scale + bn_shift)
    return h_feat / g_feat, h_feat, g_feat


# ----------------------------------------------------------------------------
# Main
# ----------------------------------------------------------------------------
if __name__ == "__main__":
    # Small shapes consistent with the module's 2D Linear/BatchNorm1d inputs.
    N = 16          # batch
    input_dim = 32
    hidden_dim = 32
    output_dim = 16
    num_layers = 3  # -> 2 hidden Linear+ReLU layers

    key = jax.random.PRNGKey(0)
    kx, kp = jax.random.split(key)
    x = jax.random.normal(kx, (N, input_dim), jnp.float32)
    params = init_params(kp, input_dim, hidden_dim, output_dim, num_layers)

    out, h_feat, g_feat = odin_large_mlp_forward(x, params)
    jax.block_until_ready((out, h_feat, g_feat))

    # Sanity check against plain-JAX reference.
    r_out, r_h, r_g = reference_forward(x, params)
    assert jnp.allclose(out, r_out, atol=1e-4, rtol=1e-4)
    assert jnp.allclose(h_feat, r_h, atol=1e-4, rtol=1e-4)
    assert jnp.allclose(g_feat, r_g, atol=1e-5, rtol=1e-4)

    print("KERNEL_OK")
</pallas_src>

<mosaic_0001>
module attributes {stable_mosaic.version = 11 : i64} {
  func.func @_odin_mlp_kernel(%arg0: i32, %arg1: memref<128x32xf32, #tpu.memory_space<vmem>>, %arg2: memref<32x32xf32, #tpu.memory_space<vmem>>, %arg3: memref<1x32xf32, #tpu.memory_space<vmem>>, %arg4: memref<32x32xf32, #tpu.memory_space<vmem>>, %arg5: memref<1x32xf32, #tpu.memory_space<vmem>>, %arg6: memref<32x128xf32, #tpu.memory_space<vmem>>, %arg7: memref<1x128xf32, #tpu.memory_space<vmem>>, %arg8: memref<128x128xf32, #tpu.memory_space<vmem>>) attributes {dimension_semantics = [#tpu.dimension_semantics<parallel>], iteration_bounds = array<i64: 1>, scalar_prefetch = 0 : i64, scratch_operands = 0 : i64, tpu.core_type = #tpu.core_type<tc>, window_params = [{transform_indices = @transform_0, window_bounds = array<i64: 128, 32>}, {pipeline_mode = #tpu.pipeline_mode<synchronous>, transform_indices = @transform_1, window_bounds = array<i64: 32, 32>}, {pipeline_mode = #tpu.pipeline_mode<synchronous>, transform_indices = @transform_2, window_bounds = array<i64: 1, 32>}, {pipeline_mode = #tpu.pipeline_mode<synchronous>, transform_indices = @transform_3, window_bounds = array<i64: 32, 32>}, {pipeline_mode = #tpu.pipeline_mode<synchronous>, transform_indices = @transform_4, window_bounds = array<i64: 1, 32>}, {pipeline_mode = #tpu.pipeline_mode<synchronous>, transform_indices = @transform_5, window_bounds = array<i64: 32, 128>}, {pipeline_mode = #tpu.pipeline_mode<synchronous>, transform_indices = @transform_6, window_bounds = array<i64: 1, 128>}, {transform_indices = @transform_7, window_bounds = array<i64: 128, 128>}]} {
    %c0 = arith.constant 0 : index
    %c0_0 = arith.constant 0 : index
    %0 = vector.load %arg1[%c0, %c0_0] : memref<128x32xf32, #tpu.memory_space<vmem>>, vector<128x32xf32>
    %c0_1 = arith.constant 0 : index
    %c0_2 = arith.constant 0 : index
    %1 = vector.load %arg2[%c0_1, %c0_2] : memref<32x32xf32, #tpu.memory_space<vmem>>, vector<32x32xf32>
    %c0_3 = arith.constant 0 : index
    %c0_4 = arith.constant 0 : index
    %2 = vector.load %arg3[%c0_3, %c0_4] : memref<1x32xf32, #tpu.memory_space<vmem>>, vector<1x32xf32>
    %cst = arith.constant dense<0.000000e+00> : vector<128x32xf32>
    %3 = tpu.matmul %0, %1, %cst {dimension_numbers = #tpu.dot_dimension_numbers<[1], [0], [0], [1], [0, 0, 1, 1], [], []>} : vector<128x32xf32>, vector<32x32xf32>, vector<128x32xf32> -> vector<128x32xf32>
    %4 = vector.broadcast %2 : vector<1x32xf32> to vector<128x32xf32>
    %5 = arith.addf %3, %4 : vector<128x32xf32>
    %cst_5 = arith.constant 0.000000e+00 : f32
    %6 = vector.broadcast %cst_5 : f32 to vector<128x32xf32>
    %7 = arith.maximumf %5, %6 : vector<128x32xf32>
    %c0_6 = arith.constant 0 : index
    %c0_7 = arith.constant 0 : index
    %8 = vector.load %arg4[%c0_6, %c0_7] : memref<32x32xf32, #tpu.memory_space<vmem>>, vector<32x32xf32>
    %c0_8 = arith.constant 0 : index
    %c0_9 = arith.constant 0 : index
    %9 = vector.load %arg5[%c0_8, %c0_9] : memref<1x32xf32, #tpu.memory_space<vmem>>, vector<1x32xf32>
    %cst_10 = arith.constant dense<0.000000e+00> : vector<128x32xf32>
    %10 = tpu.matmul %7, %8, %cst_10 {dimension_numbers = #tpu.dot_dimension_numbers<[1], [0], [0], [1], [0, 0, 1, 1], [], []>} : vector<128x32xf32>, vector<32x32xf32>, vector<128x32xf32> -> vector<128x32xf32>
    %11 = vector.broadcast %9 : vector<1x32xf32> to vector<128x32xf32>
    %12 = arith.addf %10, %11 : vector<128x32xf32>
    %cst_11 = arith.constant 0.000000e+00 : f32
    %13 = vector.broadcast %cst_11 : f32 to vector<128x32xf32>
    %14 = arith.maximumf %12, %13 : vector<128x32xf32>
    %c0_12 = arith.constant 0 : index
    %c0_13 = arith.constant 0 : index
    %15 = vector.load %arg6[%c0_12, %c0_13] : memref<32x128xf32, #tpu.memory_space<vmem>>, vector<32x128xf32>
    %cst_14 = arith.constant dense<0.000000e+00> : vector<128x128xf32>
    %16 = tpu.matmul %14, %15, %cst_14 {dimension_numbers = #tpu.dot_dimension_numbers<[1], [0], [0], [1], [0, 0, 1, 1], [], []>} : vector<128x32xf32>, vector<32x128xf32>, vector<128x128xf32> -> vector<128x128xf32>
    %c0_15 = arith.constant 0 : index
    %c0_16 = arith.constant 0 : index
    %17 = vector.load %arg7[%c0_15, %c0_16] : memref<1x128xf32, #tpu.memory_space<vmem>>, vector<1x128xf32>
    %18 = vector.broadcast %17 : vector<1x128xf32> to vector<128x128xf32>
    %19 = arith.addf %16, %18 : vector<128x128xf32>
    %20 = tpu.iota {dimensions = array<i32: 1>} : vector<128x128xi32>
    %c32_i32 = arith.constant 32 : i32
    %21 = vector.broadcast %c32_i32 : i32 to vector<128x128xi32>
    %22 = arith.cmpi eq, %20, %21 : vector<128x128xi32>
    %cst_17 = arith.constant 0.000000e+00 : f32
    %23 = vector.broadcast %cst_17 : f32 to vector<128x128xf32>
    %24 = arith.select %22, %19, %23 : vector<128x128xi1>, vector<128x128xf32>
    %cst_18 = arith.constant dense<0.000000e+00> : vector<128xf32>
    %25 = vector.multi_reduction <add>, %24, %cst_18 [1] : vector<128x128xf32> to vector<128xf32>
    %26 = vector.shape_cast %25 : vector<128xf32> to vector<128x1xf32>
    %cst_19 = arith.constant 0.000000e+00 : f32
    %27 = vector.broadcast %cst_19 : f32 to vector<128x1xf32>
    %28 = arith.subf %27, %26 : vector<128x1xf32>
    %29 = math.exp %28 : vector<128x1xf32>
    %cst_20 = arith.constant 1.000000e+00 : f32
    %30 = vector.broadcast %cst_20 : f32 to vector<128x1xf32>
    %31 = arith.addf %30, %29 : vector<128x1xf32>
    %cst_21 = arith.constant 1.000000e+00 : f32
    %32 = vector.broadcast %cst_21 : f32 to vector<128x1xf32>
    %33 = arith.divf %32, %31 : vector<128x1xf32>
    %c16_i32 = arith.constant 16 : i32
    %34 = vector.broadcast %c16_i32 : i32 to vector<128x128xi32>
    %35 = arith.cmpi slt, %20, %34 : vector<128x128xi32>
    %cst_22 = arith.constant 1.000000e+00 : f32
    %36 = vector.broadcast %cst_22 : f32 to vector<128x1xf32>
    %37 = arith.addf %36, %29 : vector<128x1xf32>
    %cst_23 = arith.constant 1.000000e+00 : f32
    %38 = vector.shape_cast %37 : vector<128x1xf32> to vector<128x1xf32>
    %39 = vector.broadcast %38 : vector<128x1xf32> to vector<128x128xf32>
    %40 = vector.broadcast %cst_23 : f32 to vector<128x128xf32>
    %41 = arith.select %35, %39, %40 : vector<128x128xi1>, vector<128x128xf32>
    %42 = arith.mulf %19, %41 : vector<128x128xf32>
    %43 = vector.shape_cast %33 : vector<128x1xf32> to vector<128x1xf32>
    %44 = vector.broadcast %43 : vector<128x1xf32> to vector<128x128xf32>
    %45 = arith.select %22, %44, %42 : vector<128x128xi1>, vector<128x128xf32>
    %c0_24 = arith.constant 0 : index
    %c0_25 = arith.constant 0 : index
    %46 = vector.load %arg8[%c0_24, %c0_25] : memref<128x128xf32, #tpu.memory_space<vmem>>, vector<128x128xf32>
    tpu.vector_store %arg8[%c0_24, %c0_25], %45 {strides = array<i32>} : memref<128x128xf32, #tpu.memory_space<vmem>>, vector<128x128xf32>,
    return
  }
  func.func @transform_0(%arg0: i32) -> (i32, i32) {
    %c0_i32 = arith.constant 0 : i32
    %c0_i32_0 = arith.constant 0 : i32
    return %arg0, %c0_i32 : i32, i32
  }
  func.func @transform_1(%arg0: i32) -> (i32, i32) {
    %c0_i32 = arith.constant 0 : i32
    %c0_i32_0 = arith.constant 0 : i32
    %c0_i32_1 = arith.constant 0 : i32
    return %c0_i32, %c0_i32_0 : i32, i32
  }
  func.func @transform_2(%arg0: i32) -> (i32, i32) {
    %c0_i32 = arith.constant 0 : i32
    %c0_i32_0 = arith.constant 0 : i32
    %c0_i32_1 = arith.constant 0 : i32
    return %c0_i32, %c0_i32_0 : i32, i32
  }
  func.func @transform_3(%arg0: i32) -> (i32, i32) {
    %c0_i32 = arith.constant 0 : i32
    %c0_i32_0 = arith.constant 0 : i32
    %c0_i32_1 = arith.constant 0 : i32
    return %c0_i32, %c0_i32_0 : i32, i32
  }
  func.func @transform_4(%arg0: i32) -> (i32, i32) {
    %c0_i32 = arith.constant 0 : i32
    %c0_i32_0 = arith.constant 0 : i32
    %c0_i32_1 = arith.constant 0 : i32
    return %c0_i32, %c0_i32_0 : i32, i32
  }
  func.func @transform_5(%arg0: i32) -> (i32, i32) {
    %c0_i32 = arith.constant 0 : i32
    %c0_i32_0 = arith.constant 0 : i32
    %c0_i32_1 = arith.constant 0 : i32
    return %c0_i32, %c0_i32_0 : i32, i32
  }
  func.func @transform_6(%arg0: i32) -> (i32, i32) {
    %c0_i32 = arith.constant 0 : i32
    %c0_i32_0 = arith.constant 0 : i32
    %c0_i32_1 = arith.constant 0 : i32
    return %c0_i32, %c0_i32_0 : i32, i32
  }
  func.func @transform_7(%arg0: i32) -> (i32, i32) {
    %c0_i32 = arith.constant 0 : i32
    %c0_i32_0 = arith.constant 0 : i32
    return %arg0, %c0_i32 : i32, i32
  }
}

</mosaic_0001>

<bundles_post_ra>
// kernel: tpu_custom_call.1
= control target key start
LH: loop header
LB: loop body
LE: loop exit
PB: predicated region body
PF: predicated region fallthrough
CT: control target
= control target key end

     0   :  { %vm54_vm0 = vcmask 261120   ;;  %s1602_s0 = inlined_call_operand.vmem [shape: f32[128,32], index: 0, kind: input, shape index: {}]   ;;  %s1603_s1 = inlined_call_operand.vmem [shape: f32[32,32], index: 1, kind: input, shape index: {}]   ;;  %s1604_s2 = inlined_call_operand.vmem [shape: f32[1,32], index: 2, kind: input, shape index: {}]   ;;  %s1605_s3 = inlined_call_operand.vmem [shape: f32[32,32], index: 3, kind: input, shape index: {}]   ;;  %s1606_s4 = inlined_call_operand.vmem [shape: f32[1,32], index: 4, kind: input, shape index: {}]   ;;  %s1607_s5 = inlined_call_operand.vmem [shape: f32[32,128], index: 5, kind: input, shape index: {}]   ;;  %s1608_s6 = inlined_call_operand.vmem [shape: f32[1,128], index: 6, kind: input, shape index: {}]   ;;  %s1609_s7 = inlined_call_operand.hbm [shape: f32[128,128], index: 7, kind: output, shape index: {}]  }
   0x1   :  { %v43_v0 = vld [vmem:[%s1603_s1] sm:$0xff]  ;;  %v44_v1 = vld [vmem:[%s1603_s1 + $0x8] sm:$0xff]  ;;  %v45_v2 = vld [vmem:[%s1603_s1 + $0x10] sm:$0xff] }
   0x2   :  { %v1123_v3 = vpack.c.bf16 %v44_v1, %v43_v0  ;;  %v46_v4 = vld [vmem:[%s1603_s1 + $0x18] sm:$0xff]  ;;  %v27_v5 = vld [vmem:[%s1602_s0] sm:$0xff]  ;;  %v265_v9 = vld [vmem:[%s1605_s3 + $0x8] sm:$0xff] }
   0x3   :  { %v1127_v6 = vpack.c.bf16 %v46_v4, %v45_v2  ;;  %1035 = vmatprep.mubr.msk.f32.mxu0 %vm54_vm0, %v27_v5  ;;  %v35_v7 = vld [vmem:[%s1602_s0 + $0x40] sm:$0xff]  ;;  %v266_v10 = vld [vmem:[%s1605_s3 + $0x10] sm:$0xff]  ;;  %v267_v11 = vld [vmem:[%s1605_s3 + $0x18] sm:$0xff] }
   0x4   :  { %1124 = vmatprep.subr.bf16.mxu0 %v1123_v3  ;;  %1147 = vmatprep.subr.bf16.mxu1 %v1123_v3  ;;  %v264_v8 = vld [vmem:[%s1605_s3] sm:$0xff]  ;;  %v28_v12 = vld [vmem:[%s1602_s0 + $0x8] sm:$0xff] }
   0x5   :  { %1126 = vmatpush3.bf16.msra.mxu0 %v1123_v3  ;;  %1149 = vmatpush3.bf16.msra.mxu1 %v1123_v3  ;;  %v36_v13 = vld [vmem:[%s1602_s0 + $0x48] sm:$0xff]  ;;  %v1131_v14 = vpack.c.bf16 %v265_v9, %v264_v8 }
   0x6   :  { %1128 = vmatprep.subr.bf16.mxu0 %v1127_v6  ;;  %1148 = vmatprep.subr.bf16.mxu1 %v1127_v6 }
   0x7   :  { %1047 = vmatprep.mubr.msk.f32.mxu1 %vm54_vm0, %v35_v7 }
   0x9   :  { %1130 = vmatpush3.bf16.msra.mxu0 %v1127_v6  ;;  %1150 = vmatpush3.bf16.msra.mxu1 %v1127_v6 }
   0xa   :  { %12 = vsyncpa [#allocation3], 0  ;;  %v29_v15 = vld [vmem:[%s1602_s0 + $0x10] sm:$0xff]  ;;  %1132 = vmatprep.subr.bf16.mxu1 %v1131_v14  ;;  %v1135_v17 = vpack.c.bf16 %v267_v11, %v266_v10  ;;  %v30_v18 = vld [vmem:[%s1602_s0 + $0x18] sm:$0xff] }
   0xb   :  { %v37_v16 = vld [vmem:[%s1602_s0 + $0x50] sm:$0xff]  ;;  %v38_v19 = vld [vmem:[%s1602_s0 + $0x58] sm:$0xff]  ;;  %v31_v20 = vld [vmem:[%s1602_s0 + $0x20] sm:$0xff] }
   0xc   :  { %1036 = vmatmul.mubr.msk.f32.vlgmr.msra.gmra.mrb[0].mxu0 %vm54_vm0, %v28_v12  ;;  %1048 = vmatmul.mubr.msk.f32.vlgmr.msra.gmra.mrb[0].mxu1 %vm54_vm0, %v36_v13  ;;  %v39_v21 = vld [vmem:[%s1602_s0 + $0x60] sm:$0xff]  ;;  %v32_v22 = vld [vmem:[%s1602_s0 + $0x28] sm:$0xff]  ;;  %v33_v24 = vld [vmem:[%s1602_s0 + $0x30] sm:$0xff] }
   0xd   :  { %1038 = vmatprep.mubr.msk.f32.mxu0 %vm54_vm0, %v29_v15  ;;  %1050 = vmatprep.mubr.msk.f32.mxu1 %vm54_vm0, %v37_v16  ;;  %v40_v23 = vld [vmem:[%s1602_s0 + $0x68] sm:$0xff]  ;;  %v41_v25 = vld [vmem:[%s1602_s0 + $0x70] sm:$0xff]  ;;  %v34_v26 = vld [vmem:[%s1602_s0 + $0x38] sm:$0xff] }
   0xe   :  { %1134 = vmatpush3.bf16.msra.mxu1 %v1131_v14  ;;  %v42_v27 = vld [vmem:[%s1602_s0 + $0x78] sm:$0xff]  ;;  %v484_v28 = vld [vmem:[%s1607_s5] sm:$0xff]  ;;  %v485_v29 = vld [vmem:[%s1607_s5 + $0x8] sm:$0xff] }
   0xf   :  { %1136 = vmatprep.subr.bf16.mxu1 %v1135_v17  ;;  %v486_v30 = vld [vmem:[%s1607_s5 + $0x10] sm:$0xff]  ;;  %v1139_v31 = vpack.c.bf16 %v485_v29, %v484_v28  ;;  %v487_v32 = vld [vmem:[%s1607_s5 + $0x18] sm:$0xff]  ;;  %v916_v34 = vld [vmem:[%s1604_s2] ss:$0 sm:$0xff] }
  0x10   :  { %1039 = vmatmul.mubr.msk.f32.gmra.mrb[2].mxu0 %vm54_vm0, %v30_v18  ;;  %1051 = vmatmul.mubr.msk.f32.gmra.mrb[2].mxu1 %vm54_vm0, %v38_v19  ;;  %v1143_v33 = vpack.c.bf16 %v487_v32, %v486_v30  ;;  %v933_v19 = vld [vmem:[%s1606_s4] ss:$0 sm:$0xff] }
  0x11   :  { %1041 = vmatprep.mubr.msk.f32.mxu0 %vm54_vm0, %v31_v20  ;;  %1053 = vmatprep.mubr.msk.f32.mxu1 %vm54_vm0, %v39_v21 }
  0x12   :  { %1138 = vmatpush3.bf16.msra.mxu1 %v1135_v17  ;;  %1140 = vmatprep.subr.bf16.mxu0 %v1139_v31 }
  0x13   :  { %1142 = vmatpush3.bf16.msra.mxu0 %v1139_v31 }
  0x14   :  { %1042 = vmatmul.mubr.msk.f32.gmra.mrb[4].mxu0 %vm54_vm0, %v32_v22  ;;  %1054 = vmatmul.mubr.msk.f32.gmra.mrb[4].mxu1 %vm54_vm0, %v40_v23 }
  0x15   :  { %1044 = vmatprep.mubr.msk.f32.mxu0 %vm54_vm0, %v33_v24  ;;  %1056 = vmatprep.mubr.msk.f32.mxu1 %vm54_vm0, %v41_v25 }
  0x16   :  { %1144 = vmatprep.subr.bf16.mxu0 %v1143_v33 }
  0x17   :  { %1146 = vmatpush3.bf16.msra.mxu0 %v1143_v33 }
  0x18   :  { %1045 = vmatmul.mubr.msk.f32.gmra.mrb[6].mxu0 %vm54_vm0, %v34_v26  ;;  %1057 = vmatmul.mubr.msk.f32.gmra.mrb[6].mxu1 %vm54_vm0, %v42_v27 }
  0xdf   :  { %v1037_v35 = vpop.f32.mrb[0].mxu0  ;;  %v1049_v36 = vpop.f32.mrb[0].mxu1 }
  0xe0   :  { %v175_v37 = vadd.f32 %v1037_v35, %v916_v34  ;;  %v169_v38 = vpop.f32.mrb[1].mxu0  ;;  %v209_v39 = vpop.f32.mrb[1].mxu1  ;;  %v215_v3 = vadd.f32 %v1049_v36, %v916_v34 }
  0xe1   :  { %v170_v40 = vadd.f32 %v916_v34, %v169_v38  ;;  %v210_v60 = vadd.f32 %v916_v34, %v209_v39 }
  0xe2   :  { %v249_v44 = vmax.f32 %v175_v37, 0.0  ;;  %v257_v7 = vmax.f32 %v215_v3, 0.0 }
  0xe3   :  { %v248_v41 = vmax.f32 %v170_v40, 0.0  ;;  %v1040_v42 = vpop.f32.mrb[2].mxu0  ;;  %v1052_v43 = vpop.f32.mrb[2].mxu1  ;;  %v256_v5 = vmax.f32 %v210_v60, 0.0 }
  0xe4   :  { %v185_v45 = vadd.f32 %v1040_v42, %v916_v34  ;;  %v179_v46 = vpop.f32.mrb[3].mxu0  ;;  %v219_v47 = vpop.f32.mrb[3].mxu1  ;;  %v225_v8 = vadd.f32 %v1052_v43, %v916_v34 }
  0xe5   :  { %v180_v48 = vadd.f32 %v916_v34, %v179_v46  ;;  %1067 = vmatprep.mubr.msk.f32.mxu1 %vm54_vm0, %v248_v41  ;;  %v220_v6 = vadd.f32 %v916_v34, %v219_v47 }
  0xe6   :  { %1068 = vmatmul.mubr.msk.f32.vlgmr.msra.gmra.mrb[8].mxu1 %vm54_vm0, %v249_v44  ;;  %v251_v52 = vmax.f32 %v185_v45, 0.0  ;;  %v259_v11 = vmax.f32 %v225_v8, 0.0 }
  0xe7   :  { %v250_v49 = vmax.f32 %v180_v48, 0.0  ;;  %v1043_v50 = vpop.f32.mrb[4].mxu0  ;;  %v1055_v51 = vpop.f32.mrb[4].mxu1  ;;  %v258_v9 = vmax.f32 %v220_v6, 0.0  ;;  %v950_v6 = vld [vmem:[%s1608_s6] ss:$0 sm:$0xff] }
  0xe8   :  { %v195_v53 = vadd.f32 %v1043_v50, %v916_v34  ;;  %v189_v54 = vpop.f32.mrb[5].mxu0  ;;  %v229_v55 = vpop.f32.mrb[5].mxu1  ;;  %v235_v12 = vadd.f32 %v1055_v51, %v916_v34  ;;  %s1242_s6 = smov [#allocation2]  }
  0xe9   :  { %v190_v56 = vadd.f32 %v916_v34, %v189_v54  ;;  %1070 = vmatprep.mubr.msk.f32.mxu1 %vm54_vm0, %v250_v49  ;;  %v230_v10 = vadd.f32 %v916_v34, %v229_v55  ;;  %s905_s9 = sshll.u32 %s1242_s6, 4  ;;  %s906_s9 = int_to_ptr.vmem [resolvable:$true] %s905_s9 }
  0xea   :  { %v253_v57 = vmax.f32 %v195_v53, 0.0  ;;  %1071 = vmatmul.mubr.msk.f32.gmra.mrb[10].mxu1 %vm54_vm0, %v251_v52  ;;  %v261_v15 = vmax.f32 %v235_v12, 0.0  ;;  %s1218_s10 = scalar_lea.vmem %s906_s9, 2048  ;;  %p1223_p1 = scmp.lt.s32.totalorder %s906_s9, %s906_s9 }
  0xeb   :  { %v252_v58 = vmax.f32 %v190_v56, 0.0  ;;  %v1046_v59 = vpop.f32.mrb[6].mxu0  ;;  %v1058_v61 = vpop.f32.mrb[6].mxu1  ;;  %v260_v13 = vmax.f32 %v230_v10, 0.0  ;;  %p1219_p0 = scmp.ne.s32.totalorder %s906_s9, %s1218_s10  ;;  %p1224_p2 = scmp.lt.s32.totalorder %s1218_s10, %s1218_s10 }
  0xec   :  { %v205_v62 = vadd.f32 %v1046_v59, %v916_v34  ;;  %v199_v63 = vpop.f32.mrb[7].mxu0  ;;  %v239_v0 = vpop.f32.mrb[7].mxu1  ;;  %v245_v16 = vadd.f32 %v1058_v61, %v916_v34 }
  0xed   :  { %v200_v1 = vadd.f32 %v916_v34, %v199_v63  ;;  %1073 = vmatprep.mubr.msk.f32.mxu1 %vm54_vm0, %v252_v58  ;;  %v240_v14 = vadd.f32 %v916_v34, %v239_v0  ;;  %p1225_p3 = por %p1224_p2, %p1223_p1 }
  0xee   :  { %v255_v2 = vmax.f32 %v205_v62, 0.0  ;;  %1074 = vmatmul.mubr.msk.f32.gmra.mrb[12].mxu1 %vm54_vm0, %v253_v57  ;;  %v263_v18 = vmax.f32 %v245_v16, 0.0 }
  0xef   :  { %v254_v4 = vmax.f32 %v200_v1, 0.0  ;;  %v262_v17 = vmax.f32 %v240_v14, 0.0  ;;  %p1226_p4 = pnand %p1225_p3, %p1219_p0 }
  0xf1   :  { %1076 = vmatprep.mubr.msk.f32.mxu1 %vm54_vm0, %v254_v4  ;;  %v688_v4 = vlaneseq }
  0xf2   :  { %1077 = vmatmul.mubr.msk.f32.gmra.mrb[14].mxu1 %vm54_vm0, %v255_v2 }
  0xf3   :  { %1079 = vmatprep.mubr.msk.f32.mxu1 %vm54_vm0, %v256_v5  ;;  %v1423_v5 = vand.u32 127, %v688_v4 }
  0xf5   :  { %vm690_vm1 = vcmp.eq.s32.totalorder %v1423_v5, 32  ;;  %vm835_vm2 = vcmp.lt.s32.totalorder %v1423_v5, 16 }
  0xf6   :  { %1080 = vmatmul.mubr.msk.f32.gmra.mrb[16].mxu1 %vm54_vm0, %v257_v7 }
  0xf7   :  { %1082 = vmatprep.mubr.msk.f32.mxu1 %vm54_vm0, %v258_v9 }
  0xfa   :  { %1083 = vmatmul.mubr.msk.f32.gmra.mrb[18].mxu1 %vm54_vm0, %v259_v11 }
  0xfb   :  { %1085 = vmatprep.mubr.msk.f32.mxu1 %vm54_vm0, %v260_v13 }
  0xfe   :  { %1086 = vmatmul.mubr.msk.f32.gmra.mrb[20].mxu1 %vm54_vm0, %v261_v15 }
  0xff   :  { %1088 = vmatprep.mubr.msk.f32.mxu1 %vm54_vm0, %v262_v17 }
 0x102   :  { %1089 = vmatmul.mubr.msk.f32.gmra.mrb[22].mxu1 %vm54_vm0, %v263_v18 }
 0x1b9   :  { %v1069_v20 = vpop.f32.mrb[8].mxu1 }
 0x1ba   :  { %v395_v21 = vadd.f32 %v1069_v20, %v933_v19  ;;  %v389_v22 = vpop.f32.mrb[9].mxu1 }
 0x1bb   :  { %v390_v23 = vadd.f32 %v933_v19, %v389_v22 }
 0x1bc   :  { %v469_v26 = vmax.f32 %v395_v21, 0.0 }
 0x1bd   :  { %v468_v24 = vmax.f32 %v390_v23, 0.0  ;;  %v1072_v25 = vpop.f32.mrb[10].mxu1 }
 0x1be   :  { %v405_v27 = vadd.f32 %v1072_v25, %v933_v19  ;;  %v399_v28 = vpop.f32.mrb[11].mxu1 }
 0x1bf   :  { %v400_v29 = vadd.f32 %v933_v19, %v399_v28  ;;  %1099 = vmatprep.mubr.msk.f32.mxu0 %vm54_vm0, %v468_v24 }
 0x1c0   :  { %1100 = vmatmul.mubr.msk.f32.vlgmr.msra.gmra.mrb[8].mxu0 %vm54_vm0, %v469_v26  ;;  %v471_v32 = vmax.f32 %v405_v27, 0.0 }
 0x1c1   :  { %v470_v30 = vmax.f32 %v400_v29, 0.0  ;;  %v1075_v31 = vpop.f32.mrb[12].mxu1 }
 0x1c2   :  { %v415_v33 = vadd.f32 %v1075_v31, %v933_v19  ;;  %v409_v34 = vpop.f32.mrb[13].mxu1 }
 0x1c3   :  { %v410_v35 = vadd.f32 %v933_v19, %v409_v34  ;;  %1102 = vmatprep.mubr.msk.f32.mxu0 %vm54_vm0, %v470_v30 }
 0x1c4   :  { %v473_v36 = vmax.f32 %v415_v33, 0.0  ;;  %1103 = vmatmul.mubr.msk.f32.gmra.mrb[10].mxu0 %vm54_vm0, %v471_v32 }
 0x1c5   :  { %v472_v37 = vmax.f32 %v410_v35, 0.0  ;;  %v1078_v38 = vpop.f32.mrb[14].mxu1 }
 0x1c6   :  { %v425_v39 = vadd.f32 %v1078_v38, %v933_v19  ;;  %v419_v40 = vpop.f32.mrb[15].mxu1 }
 0x1c7   :  { %v420_v41 = vadd.f32 %v933_v19, %v419_v40  ;;  %1105 = vmatprep.mubr.msk.f32.mxu0 %vm54_vm0, %v472_v37 }
 0x1c8   :  { %v475_v42 = vmax.f32 %v425_v39, 0.0  ;;  %1106 = vmatmul.mubr.msk.f32.gmra.mrb[12].mxu0 %vm54_vm0, %v473_v36 }
 0x1c9   :  { %v474_v43 = vmax.f32 %v420_v41, 0.0  ;;  %v1081_v44 = vpop.f32.mrb[16].mxu1 }
 0x1ca   :  { %v435_v45 = vadd.f32 %v1081_v44, %v933_v19  ;;  %v429_v46 = vpop.f32.mrb[17].mxu1 }
 0x1cb   :  { %v430_v47 = vadd.f32 %v933_v19, %v429_v46  ;;  %1108 = vmatprep.mubr.msk.f32.mxu0 %vm54_vm0, %v474_v43 }
 0x1cc   :  { %v477_v48 = vmax.f32 %v435_v45, 0.0  ;;  %1109 = vmatmul.mubr.msk.f32.gmra.mrb[14].mxu0 %vm54_vm0, %v475_v42 }
 0x1cd   :  { %v476_v49 = vmax.f32 %v430_v47, 0.0  ;;  %v1084_v50 = vpop.f32.mrb[18].mxu1 }
 0x1ce   :  { %v445_v51 = vadd.f32 %v1084_v50, %v933_v19  ;;  %v439_v52 = vpop.f32.mrb[19].mxu1 }
 0x1cf   :  { %v440_v53 = vadd.f32 %v933_v19, %v439_v52  ;;  %1111 = vmatprep.mubr.msk.f32.mxu0 %vm54_vm0, %v476_v49 }
 0x1d0   :  { %v479_v54 = vmax.f32 %v445_v51, 0.0  ;;  %1112 = vmatmul.mubr.msk.f32.gmra.mrb[16].mxu0 %vm54_vm0, %v477_v48 }
 0x1d1   :  { %v478_v55 = vmax.f32 %v440_v53, 0.0  ;;  %v1087_v56 = vpop.f32.mrb[20].mxu1 }
 0x1d2   :  { %v455_v57 = vadd.f32 %v1087_v56, %v933_v19  ;;  %v449_v58 = vpop.f32.mrb[21].mxu1 }
 0x1d3   :  { %v450_v59 = vadd.f32 %v933_v19, %v449_v58  ;;  %1114 = vmatprep.mubr.msk.f32.mxu0 %vm54_vm0, %v478_v55 }
 0x1d4   :  { %v481_v60 = vmax.f32 %v455_v57, 0.0  ;;  %1115 = vmatmul.mubr.msk.f32.gmra.mrb[18].mxu0 %vm54_vm0, %v479_v54 }
 0x1d5   :  { %v480_v61 = vmax.f32 %v450_v59, 0.0  ;;  %v1090_v62 = vpop.f32.mrb[22].mxu1 }
 0x1d6   :  { %v465_v63 = vadd.f32 %v1090_v62, %v933_v19  ;;  %v459_v0 = vpop.f32.mrb[23].mxu1 }
 0x1d7   :  { %v460_v1 = vadd.f32 %v933_v19, %v459_v0  ;;  %1117 = vmatprep.mubr.msk.f32.mxu0 %vm54_vm0, %v480_v61 }
 0x1d8   :  { %v483_v2 = vmax.f32 %v465_v63, 0.0  ;;  %1118 = vmatmul.mubr.msk.f32.gmra.mrb[20].mxu0 %vm54_vm0, %v481_v60 }
 0x1d9   :  { %v482_v3 = vmax.f32 %v460_v1, 0.0 }
 0x1db   :  { %1120 = vmatprep.mubr.msk.f32.mxu0 %vm54_vm0, %v482_v3 }
 0x1dc   :  { %1121 = vmatmul.mubr.msk.f32.gmra.mrb[22].mxu0 %vm54_vm0, %v483_v2 }
 0x293   :  { %v1101_v7 = vpop.f32.mrb[8].mxu0 }
 0x294   :  { %v1429_v8 = vadd.f32 %v1101_v7, %v950_v6  ;;  %v609_v9 = vpop.f32.mrb[9].mxu0 }
 0x295   :  { %v1431_v10 = vadd.f32 %v950_v6, %v609_v9 }
 0x296   :  { %v692_v11 = vsel %vm690_vm1, %v1429_v8, 0.0 }
 0x297   :  { %709 = vadd.xlane.f32.xlu0 %v692_v11  ;;  %v1104_v12 = vpop.f32.mrb[10].mxu0  ;;  %v691_v17 = vsel %vm690_vm1, %v1431_v10, 0.0 }
 0x298   :  { %v1436_v13 = vadd.f32 %v1104_v12, %v950_v6  ;;  %v619_v14 = vpop.f32.mrb[11].mxu0 }
 0x299   :  { %v1438_v15 = vadd.f32 %v950_v6, %v619_v14 }
 0x29a   :  { %v694_v16 = vsel %vm690_vm1, %v1436_v13, 0.0 }
 0x29b   :  { %713 = vadd.xlane.f32.xlu1 %v694_v16  ;;  %v1107_v18 = vpop.f32.mrb[12].mxu0  ;;  %707 = vadd.xlane.f32.xlu0 %v691_v17  ;;  %v693_v22 = vsel %vm690_vm1, %v1438_v15, 0.0 }
 0x29c   :  { %v629_v19 = vpop.f32.mrb[13].mxu0  ;;  %v1448_v21 = vadd.f32 %v1107_v18, %v950_v6 }
 0x29d   :  { %v1446_v20 = vadd.f32 %v950_v6, %v629_v19 }
 0x29e   :  { %v696_v28 = vsel %vm690_vm1, %v1448_v21, 0.0 }
 0x29f   :  { %v1110_v23 = vpop.f32.mrb[14].mxu0  ;;  %711 = vadd.xlane.f32.xlu1 %v693_v22  ;;  %v695_v24 = vsel %vm690_vm1, %v1446_v20, 0.0 }
 0x2a0   :  { %v639_v25 = vpop.f32.mrb[15].mxu0  ;;  %715 = vadd.xlane.f32.xlu0 %v695_v24  ;;  %v1458_v27 = vadd.f32 %v1110_v23, %v950_v6 }
 0x2a1   :  { %v1456_v26 = vadd.f32 %v950_v6, %v639_v25 }
 0x2a2   :  { %v698_v34 = vsel %vm690_vm1, %v1458_v27, 0.0 }
 0x2a3   :  { %v1113_v29 = vpop.f32.mrb[16].mxu0  ;;  %717 = vadd.xlane.f32.xlu1 %v696_v28  ;;  %v697_v30 = vsel %vm690_vm1, %v1456_v26, 0.0 }
 0x2a4   :  { %v649_v31 = vpop.f32.mrb[17].mxu0  ;;  %719 = vadd.xlane.f32.xlu0 %v697_v30  ;;  %v1468_v33 = vadd.f32 %v1113_v29, %v950_v6 }
 0x2a5   :  { %v1466_v32 = vadd.f32 %v950_v6, %v649_v31 }
 0x2a6   :  { %v700_v40 = vsel %vm690_vm1, %v1468_v33, 0.0 }
 0x2a7   :  { %v1116_v35 = vpop.f32.mrb[18].mxu0  ;;  %721 = vadd.xlane.f32.xlu1 %v698_v34  ;;  %v699_v36 = vsel %vm690_vm1, %v1466_v32, 0.0 }
 0x2a8   :  { %v659_v37 = vpop.f32.mrb[19].mxu0  ;;  %723 = vadd.xlane.f32.xlu0 %v699_v36  ;;  %v1478_v39 = vadd.f32 %v1116_v35, %v950_v6 }
 0x2a9   :  { %v1476_v38 = vadd.f32 %v950_v6, %v659_v37 }
 0x2aa   :  { %v702_v46 = vsel %vm690_vm1, %v1478_v39, 0.0 }
 0x2ab   :  { %v1119_v41 = vpop.f32.mrb[20].mxu0  ;;  %725 = vadd.xlane.f32.xlu1 %v700_v40  ;;  %v701_v42 = vsel %vm690_vm1, %v1476_v38, 0.0 }
 0x2ac   :  { %v669_v43 = vpop.f32.mrb[21].mxu0  ;;  %727 = vadd.xlane.f32.xlu0 %v701_v42  ;;  %v1488_v45 = vadd.f32 %v1119_v41, %v950_v6 }
 0x2ad   :  { %v1486_v44 = vadd.f32 %v950_v6, %v669_v43 }
 0x2ae   :  { %v704_v52 = vsel %vm690_vm1, %v1488_v45, 0.0 }
 0x2af   :  { %v1122_v47 = vpop.f32.mrb[22].mxu0  ;;  %729 = vadd.xlane.f32.xlu1 %v702_v46  ;;  %v703_v48 = vsel %vm690_vm1, %v1486_v44, 0.0 }
 0x2b0   :  { %v679_v49 = vpop.f32.mrb[23].mxu0  ;;  %731 = vadd.xlane.f32.xlu0 %v703_v48  ;;  %v1498_v51 = vadd.f32 %v1122_v47, %v950_v6 }
 0x2b1   :  { %v1496_v50 = vadd.f32 %v950_v6, %v679_v49 }
 0x2b2   :  { %v706_v54 = vsel %vm690_vm1, %v1498_v51, 0.0 }
 0x2b3   :  { %733 = vadd.xlane.f32.xlu1 %v704_v52  ;;  %v705_v53 = vsel %vm690_vm1, %v1496_v50, 0.0 }
 0x2b4   :  { %735 = vadd.xlane.f32.xlu0 %v705_v53 }
 0x2b7   :  { %737 = vadd.xlane.f32.xlu1 %v706_v54 }
 0x324   :  { %v710_v55 = vpop.xlane.xlu0 %709 }
 0x325   :  { %v740_v56 = vsub.f32 0.0, %v710_v55 }
 0x327   :  { %v757_v57 = vmul.f32 1.442695, %v740_v56 }
 0x328   :  { %v714_v58 = vpop.xlane.xlu1 %713  ;;  %v708_v59 = vpop.xlane.xlu0 %707 }
 0x329   :  { %1154 = vpow2.f32 %v757_v57  ;;  %v742_v60 = vsub.f32 0.0, %v714_v58  ;;  %v739_v61 = vsub.f32 0.0, %v708_v59 }
 0x32b   :  { %v761_v62 = vmul.f32 1.442695, %v742_v60  ;;  %v755_v63 = vmul.f32 1.442695, %v739_v61 }
 0x32c   :  { %v712_v0 = vpop.xlane.xlu1 %711 }
 0x32d   :  { %1156 = vpow2.f32 %v761_v62  ;;  %v741_v1 = vsub.f32 0.0, %v712_v0  ;;  %v716_v2 = vpop.xlane.xlu0 %715 }
 0x32e   :  { %1158 = vpow2.f32 %v755_v63  ;;  %v743_v3 = vsub.f32 0.0, %v716_v2 }
 0x32f   :  { %v759_v4 = vmul.f32 1.442695, %v741_v1 }
 0x330   :  { %v763_v6 = vmul.f32 1.442695, %v743_v3  ;;  %v718_v7 = vpop.xlane.xlu1 %717 }
 0x331   :  { %1160 = vpow2.f32 %v759_v4  ;;  %v744_v9 = vsub.f32 0.0, %v718_v7  ;;  %v720_v11 = vpop.xlane.xlu0 %719 }
 0x332   :  { %1162 = vpow2.f32 %v763_v6  ;;  %v745_v12 = vsub.f32 0.0, %v720_v11 }
 0x333   :  { %v1155_v14 = vpop.eup %1154  ;;  %v765_v16 = vmul.f32 1.442695, %v744_v9 }
 0x334   :  { %v788_v17 = vadd.f32 1.0, %v1155_v14  ;;  %v767_v18 = vmul.f32 1.442695, %v745_v12  ;;  %v722_v19 = vpop.xlane.xlu1 %721 }
 0x335   :  { %1164 = vpow2.f32 %v765_v16  ;;  %v746_v22 = vsub.f32 0.0, %v722_v19  ;;  %v724_v23 = vpop.xlane.xlu0 %723 }
 0x336   :  { %1166 = vrcp.f32 %v788_v17  ;;  %v747_v24 = vsub.f32 0.0, %v724_v23  ;;  %v837_v46 = vsel %vm835_vm2, %v788_v17, 1.0 }
 0x337   :  { %v1157_v25 = vpop.eup %1156  ;;  %1168 = vpow2.f32 %v767_v18  ;;  %v769_v28 = vmul.f32 1.442695, %v746_v22  ;;  %v853_v57 = vmul.f32 %v837_v46, %v1429_v8 }
 0x338   :  { %v1159_v29 = vpop.eup %1158  ;;  %v790_v30 = vadd.f32 1.0, %v1157_v25  ;;  %v771_v31 = vmul.f32 1.442695, %v747_v24  ;;  %v726_v34 = vpop.xlane.xlu1 %725 }
 0x339   :  { %v787_v35 = vadd.f32 1.0, %v1159_v29  ;;  %1170 = vpow2.f32 %v769_v28  ;;  %v748_v36 = vsub.f32 0.0, %v726_v34  ;;  %v728_v37 = vpop.xlane.xlu0 %727 }
 0x33a   :  { %1172 = vrcp.f32 %v790_v30  ;;  %v749_v40 = vsub.f32 0.0, %v728_v37  ;;  %v839_v58 = vsel %vm835_vm2, %v790_v30, 1.0 }
 0x33b   :  { %v1161_v41 = vpop.eup %1160  ;;  %1174 = vrcp.f32 %v787_v35  ;;  %v773_v42 = vmul.f32 1.442695, %v748_v36  ;;  %v836_v61 = vsel %vm835_vm2, %v787_v35, 1.0  ;;  %v855_v9 = vmul.f32 %v839_v58, %v1436_v13 }
 0x33c   :  { %v1163_v43 = vpop.eup %1162  ;;  %v789_v47 = vadd.f32 1.0, %v1161_v41  ;;  %1176 = vpow2.f32 %v771_v31  ;;  %v775_v48 = vmul.f32 1.442695, %v749_v40  ;;  %v730_v49 = vpop.xlane.xlu1 %729  ;;  %v852_v11 = vmul.f32 %v836_v61, %v1431_v10 }
 0x33d   :  { %v791_v52 = vadd.f32 1.0, %v1163_v43  ;;  %1178 = vpow2.f32 %v773_v42  ;;  %v750_v53 = vsub.f32 0.0, %v730_v49  ;;  %v732_v54 = vpop.xlane.xlu0 %731 }
 0x33e   :  { %1180 = vrcp.f32 %v789_v47  ;;  %v751_v55 = vsub.f32 0.0, %v732_v54  ;;  %v838_v16 = vsel %vm835_vm2, %v789_v47, 1.0 }
 0x33f   :  { %v1165_v56 = vpop.eup %1164  ;;  %1182 = vrcp.f32 %v791_v52  ;;  %v777_v59 = vmul.f32 1.442695, %v750_v53  ;;  %v840_v24 = vsel %vm835_vm2, %v791_v52, 1.0  ;;  %v854_v29 = vmul.f32 %v838_v16, %v1438_v15 }
 0x340   :  { %v1167_v60 = vpop.eup %1166  ;;  %v792_v62 = vadd.f32 1.0, %v1165_v56  ;;  %1184 = vpow2.f32 %v775_v48  ;;  %v779_v63 = vmul.f32 1.442695, %v751_v55  ;;  %v734_v0 = vpop.xlane.xlu1 %733  ;;  %v856_v35 = vmul.f32 %v840_v24, %v1446_v20 }
 0x341   :  { %v1169_v1 = vpop.eup %1168  ;;  %v869_v2 = vsel %vm690_vm1, %v1167_v60, %v853_v57  ;;  %1186 = vpow2.f32 %v777_v59  ;;  %v752_v3 = vsub.f32 0.0, %v734_v0  ;;  %v736_v8 = vpop.xlane.xlu0 %735 }
 0x342   :  { %885 = vst [vmem:[#allocation2 + $0x8] sm:$0xff] %v869_v2  ;;  %1188 = vrcp.f32 %v792_v62  ;;  %v793_v4 = vadd.f32 1.0, %v1169_v1  ;;  %v753_v6 = vsub.f32 0.0, %v736_v8  ;;  %v841_v36 = vsel %vm835_vm2, %v792_v62, 1.0 }
 0x343   :  { %v1171_v7 = vpop.eup %1170  ;;  %1190 = vpow2.f32 %v779_v63  ;;  %v781_v12 = vmul.f32 1.442695, %v752_v3  ;;  %v857_v20 = vmul.f32 %v841_v36, %v1448_v21 }
 0x344   :  { %v1173_v14 = vpop.eup %1172  ;;  %1192 = vrcp.f32 %v793_v4  ;;  %v794_v17 = vadd.f32 1.0, %v1171_v7  ;;  %v783_v18 = vmul.f32 1.442695, %v753_v6  ;;  %v738_v19 = vpop.xlane.xlu1 %737  ;;  %v842_v43 = vsel %vm835_vm2, %v793_v4, 1.0 }
 0x345   :  { %v1175_v22 = vpop.eup %1174  ;;  %v871_v23 = vsel %vm690_vm1, %v1173_v14, %v855_v9  ;;  %1194 = vpow2.f32 %v781_v12  ;;  %v754_v13 = vsub.f32 0.0, %v738_v19  ;;  %v858_v55 = vmul.f32 %v842_v43, %v1456_v26 }
 0x346   :  { %v1177_v10 = vpop.eup %1176  ;;  %887 = vst [vmem:[#allocation2 + $0x18] sm:$0xff] %v871_v23  ;;  %v868_v25 = vsel %vm690_vm1, %v1175_v22, %v852_v11  ;;  %1196 = vrcp.f32 %v794_v17  ;;  %v843_v49 = vsel %vm835_vm2, %v794_v17, 1.0 }
 0x347   :  { %v1179_v28 = vpop.eup %1178  ;;  %884 = vst [vmem:[#allocation2] sm:$0xff] %v868_v25  ;;  %v795_v30 = vadd.f32 1.0, %v1177_v10  ;;  %1198 = vpow2.f32 %v783_v18  ;;  %v785_v31 = vmul.f32 1.442695, %v754_v13  ;;  %v859_v59 = vmul.f32 %v843_v49, %v1458_v27 }
 0x348   :  { %v1181_v34 = vpop.eup %1180  ;;  %v796_v37 = vadd.f32 1.0, %v1179_v28 }
 0x349   :  { %v1183_v40 = vpop.eup %1182  ;;  %v870_v41 = vsel %vm690_vm1, %v1181_v34, %v854_v29  ;;  %1200 = vrcp.f32 %v795_v30  ;;  %v844_v60 = vsel %vm835_vm2, %v795_v30, 1.0 }
 0x34a   :  { %v1185_v42 = vpop.eup %1184  ;;  %886 = vst [vmem:[#allocation2 + $0x10] sm:$0xff] %v870_v41  ;;  %v872_v15 = vsel %vm690_vm1, %v1183_v40, %v856_v35  ;;  %1202 = vrcp.f32 %v796_v37  ;;  %v845_v62 = vsel %vm835_vm2, %v796_v37, 1.0  ;;  %v860_v1 = vmul.f32 %v844_v60, %v1466_v32 }
 0x34b   :  { %v1187_v46 = vpop.eup %1186  ;;  %888 = vst [vmem:[#allocation2 + $0x20] sm:$0xff] %v872_v15  ;;  %v797_v47 = vadd.f32 1.0, %v1185_v42  ;;  %1204 = vpow2.f32 %v785_v31  ;;  %v861_v3 = vmul.f32 %v845_v62, %v1468_v33 }
 0x34c   :  { %v1189_v48 = vpop.eup %1188  ;;  %v798_v52 = vadd.f32 1.0, %v1187_v46 }
 0x34d   :  { %v1191_v53 = vpop.eup %1190  ;;  %v873_v54 = vsel %vm690_vm1, %v1189_v48, %v857_v20  ;;  %1206 = vrcp.f32 %v797_v47  ;;  %v846_v8 = vsel %vm835_vm2, %v797_v47, 1.0 }
 0x34e   :  { %v1193_v56 = vpop.eup %1192  ;;  %889 = vst [vmem:[#allocation2 + $0x28] sm:$0xff] %v873_v54  ;;  %1208 = vrcp.f32 %v798_v52  ;;  %v799_v57 = vadd.f32 1.0, %v1191_v53  ;;  %v847_v7 = vsel %vm835_vm2, %v798_v52, 1.0  ;;  %v862_v11 = vmul.f32 %v846_v8, %v1476_v38 }
 0x34f   :  { %v1195_v58 = vpop.eup %1194  ;;  %v874_v21 = vsel %vm690_vm1, %v1193_v56, %v858_v55  ;;  %v863_v16 = vmul.f32 %v847_v7, %v1478_v39 }
 0x350   :  { %v1197_v61 = vpop.eup %1196  ;;  %890 = vst [vmem:[#allocation2 + $0x30] sm:$0xff] %v874_v21  ;;  %1210 = vrcp.f32 %v799_v57  ;;  %v800_v26 = vadd.f32 1.0, %v1195_v58  ;;  %v848_v33 = vsel %vm835_vm2, %v799_v57, 1.0 }
 0x351   :  { %v1199_v63 = vpop.eup %1198  ;;  %v875_v0 = vsel %vm690_vm1, %v1197_v61, %v859_v59  ;;  %v864_v38 = vmul.f32 %v848_v33, %v1486_v44 }
 0x352   :  { %891 = vst [vmem:[#allocation2 + $0x38] sm:$0xff] %v875_v0  ;;  %1212 = vrcp.f32 %v800_v26  ;;  %v801_v2 = vadd.f32 1.0, %v1199_v63  ;;  %v849_v19 = vsel %vm835_vm2, %v800_v26, 1.0 }
 0x353   :  { %v1201_v27 = vpop.eup %1200  ;;  %v865_v13 = vmul.f32 %v849_v19, %v1488_v45 }
 0x354   :  { %v1203_v4 = vpop.eup %1202  ;;  %v876_v6 = vsel %vm690_vm1, %v1201_v27, %v860_v1  ;;  %1214 = vrcp.f32 %v801_v2  ;;  %v850_v24 = vsel %vm835_vm2, %v801_v2, 1.0 }
 0x355   :  { %v1205_v9 = vpop.eup %1204  ;;  %892 = vst [vmem:[#allocation2 + $0x40] sm:$0xff] %v876_v6  ;;  %v877_v32 = vsel %vm690_vm1, %v1203_v4, %v861_v3  ;;  %v866_v28 = vmul.f32 %v850_v24, %v1496_v50 }
 0x356   :  { %893 = vst [vmem:[#allocation2 + $0x48] sm:$0xff] %v877_v32  ;;  %v802_v12 = vadd.f32 1.0, %v1205_v9 }
 0x357   :  { %v1207_v14 = vpop.eup %1206 }
 0x358   :  { %v1209_v17 = vpop.eup %1208  ;;  %v878_v18 = vsel %vm690_vm1, %v1207_v14, %v862_v11  ;;  %1216 = vrcp.f32 %v802_v12  ;;  %v851_v44 = vsel %vm835_vm2, %v802_v12, 1.0 }
 0x359   :  { %894 = vst [vmem:[#allocation2 + $0x50] sm:$0xff] %v878_v18  ;;  %v879_v22 = vsel %vm690_vm1, %v1209_v17, %v863_v16  ;;  %v867_v45 = vmul.f32 %v851_v44, %v1498_v51 }
 0x35a   :  { %v1211_v23 = vpop.eup %1210  ;;  %895 = vst [vmem:[#allocation2 + $0x58] sm:$0xff] %v879_v22 }
 0x35b   :  { %v880_v39 = vsel %vm690_vm1, %v1211_v23, %v864_v38 }
 0x35c   :  { %v1213_v10 = vpop.eup %1212  ;;  %896 = vst [vmem:[#allocation2 + $0x60] sm:$0xff] %v880_v39 }
 0x35d   :  { %v881_v25 = vsel %vm690_vm1, %v1213_v10, %v865_v13 }
 0x35e   :  { %v1215_v29 = vpop.eup %1214  ;;  %897 = vst [vmem:[#allocation2 + $0x68] sm:$0xff] %v881_v25 }
 0x35f   :  { %v882_v30 = vsel %vm690_vm1, %v1215_v29, %v866_v28 }
 0x360   :  { %898 = vst [vmem:[#allocation2 + $0x70] sm:$0xff] %v882_v30 }
 0x362   :  { %v1217_v31 = vpop.eup %1216 }
 0x363   :  { %v883_v34 = vsel %vm690_vm1, %v1217_v31, %v867_v45 }
 0x364   :  { %899 = vst [vmem:[#allocation2 + $0x78] sm:$0xff] %v883_v34 }
 0x365   :  { %1229 = shalt.err (!%p1226_p4)
}
 0x366   :  { %s1230_s1 = scalar_lea.hbm %s1609_s7, 2048 }
 0x367   :  { %p1231_p5 = scmp.ne.s32.totalorder %s1609_s7, %s1230_s1  ;;  %p1234_p6 = scmp.lt.u32.totalorder %s1230_s1, %s1609_s7 }
 0x369   :  { %p1236_p7 = pnand %p1234_p6, %p1231_p5 }
 0x36b   :  { %1239 = shalt.err (!%p1236_p7)
}
 0x36c   :  { %s1243_s17 = smov 128   ;;  %s1244_s18 = smov 8  }
 0x36d   :  { %911 = dma.vmem_to_hbm [thread:$0]  %s906_s9, 2048, %s1609_s7, [#allocation3], %s1243_s17, %s1243_s17, %s1244_s18  }
 0x36e   :  { %1240 = dma.done.wait [#allocation3], 2048  }
 0x36f   :  { %1241 = vsyncadd [#allocation3], 4294965248 }
 0x370   :  { %915 = vsyncpa [#allocation3], 1 }

</bundles_post_ra>
